<compile_context>
chip_gen: v7x
topology: tpu7x:2x2x1
jax: 0.10.0
libtpu: 0.0.40
codegen_flags: <defaults>
</compile_context>

<pallas_src>
import functools

import jax
import jax.numpy as jnp
import numpy as np
from jax.experimental import pallas as pl
from jax.experimental.pallas import tpu as pltpu

_PAD_LOGIT = -1e30   # pad-class logit: exp() underflows to 0 but every value stays finite
_LANES = 128


def _cdiv(a, b):
    return -(-a // b)


def _round_up(x, m):
    return _cdiv(x, m) * m


def _pick_block_rows(n_packed, bytes_per_row, requested=None):
    """Packed rows per grid step.

    Power-of-two multiple of 32 so (a) the int8 one-hot tile stays (32,128)-aligned and
    (b) the in-kernel halving fold stays sublane aligned.  Sized so the double-buffered
    working set stays <= ~10 MiB: fits v5e's 16 MiB default scoped VMEM and v7x's 64 MiB
    physical VMEM without vmem_limit_bytes overrides.
    """
    granule = 32
    if requested is None:
        budget = 10 << 20
        bn = max(granule, budget // (2 * bytes_per_row))
        bn = min(bn, 4096)          # ~2.5 MiB of real HBM bytes per step at C=8
        if n_packed >= 4 * granule:
            # v7x has two TensorCores: keep grid >= 2 so "parallel" sharding has work.
            bn = min(bn, _round_up(_cdiv(n_packed, 2), granule))
    else:
        bn = max(granule, int(requested))
    bn = min(bn, _round_up(n_packed, granule))
    p2 = granule
    while p2 * 2 <= bn:
        p2 *= 2
    return p2


def _pow_int_or_float(x, gamma):
    """x ** gamma, specialised to square-and-multiply for small integer gamma."""
    g = float(gamma)
    if g.is_integer() and 0.0 <= g <= 16.0:
        n = int(g)
        if n == 0:
            return jnp.ones_like(x)
        result = None
        base = x
        while n:
            if n & 1:
                result = base if result is None else result * base
            n >>= 1
            if n:
                base = base * base
        return result
    return x ** g


def _lane_losses(x, onehot, alpha_row, gamma, gmat):
    """Per-lane focal loss; nonzero only at each logical row's target lane.

    x:         (bn, L) logits; L lanes hold `pack` logical rows of `cp` classes each.
    onehot:    (bn, L) int8; 1 at the target lane of every valid logical row, else 0.
    alpha_row: (1, L)  f32; per-lane class weight (alpha tiled across packed groups).
    gmat:      (L, L)  bf16 block-diagonal 0/1 group matrix, or None (one group per row).
    """
    xf = x.astype(jnp.float32)
    # Whole-row max: >= every group's max, so exp() never overflows.
    m = jnp.max(xf, axis=-1, keepdims=True)
    shifted = xf - m
    e = jnp.exp(shifted)

    if gmat is None:
        # One logical row per vreg row: plain softmax denominator (exact f32 reduce).
        s = jnp.sum(e, axis=-1, keepdims=True)
    else:
        # Segmented (per cp-lane group) sum + broadcast in one MXU matmul (MXU is
        # otherwise idle).  Split e into an exactly-bf16 head plus a small tail so a
        # single-pass bf16 MXU still yields ~1e-6 relative accuracy on the denominator.
        e_hi = e.astype(jnp.bfloat16)
        e_lo = (e - e_hi.astype(jnp.float32)).astype(jnp.bfloat16)
        s = (jnp.dot(e_hi, gmat, preferred_element_type=jnp.float32)
             + jnp.dot(e_lo, gmat, preferred_element_type=jnp.float32))
    # Guard against a fully-underflowed group (a logical row whose logits sit >~88 below
    # the packed-row max, incl. padded rows when real logits are huge): keep it finite
    # instead of NaN-poisoning the tile sum.
    # TODO(synk): a per-group max would also make such extreme rows accurate.
    s = jnp.maximum(s, 1e-30)

    log_probs = shifted - jnp.log(s)
    p = e / s
    # Matches the reference's (1 - p).  The clamp keeps p~1 rounding from going negative
    # (matters for non-integer gamma).
    # TODO(synk): -expm1(log_probs) is more accurate as p -> 1 if Mosaic grows that op.
    one_minus_p = jnp.maximum(1.0 - p, 0.0)
    w = _pow_int_or_float(one_minus_p, gamma)
    weight = onehot.astype(jnp.float32) * alpha_row
    return (weight * w) * (-log_probs)


def _fold_rows(v):
    """(bn, L) -> (8, L) partial sums with pure VPU halving adds (bn = 8 * 2^k)."""
    while v.shape[0] > 8:
        h = v.shape[0] // 2
        v = v[:h, :] + v[h:, :]
    return v


def _partial_kernel_packed(x_ref, oh_ref, a_ref, g_ref, out_ref, *, gamma):
    loss = _lane_losses(x_ref[...], oh_ref[...], a_ref[...], gamma, g_ref[...])
    out_ref[...] = _fold_rows(loss)


def _partial_kernel_flat(x_ref, oh_ref, a_ref, out_ref, *, gamma):
    loss = _lane_losses(x_ref[...], oh_ref[...], a_ref[...], gamma, None)
    out_ref[...] = _fold_rows(loss)


def _rows_kernel_packed(x_ref, oh_ref, a_ref, g_ref, out_ref, *, gamma):
    out_ref[...] = _lane_losses(x_ref[...], oh_ref[...], a_ref[...], gamma, g_ref[...])


def _rows_kernel_flat(x_ref, oh_ref, a_ref, out_ref, *, gamma):
    out_ref[...] = _lane_losses(x_ref[...], oh_ref[...], a_ref[...], gamma, None)


def _focal_loss_ref(inputs, targets, alpha_vec, gamma, reduction):
    """Pure-XLA reference / small-N fast path (semantics of the torch module)."""
    log_probs = jax.nn.log_softmax(inputs.astype(jnp.float32), axis=-1)
    t = targets.reshape(-1).astype(jnp.int32)
    log_p = jnp.take_along_axis(log_probs, t[:, None], axis=-1)[:, 0]
    p = jnp.exp(log_p)
    alpha_factor = 1.0 if alpha_vec is None else alpha_vec[t]
    loss = -alpha_factor * (1.0 - p) ** gamma * log_p
    if reduction == "mean":
        return loss.mean()
    if reduction == "sum":
        return loss.sum()
    return loss


def focal_loss(inputs, targets, alpha=None, gamma=2.0, reduction="mean",
               block_rows=None, min_rows_for_kernel=2048):
    """Pallas FocalLoss forward. inputs: [N, C] float logits; targets: [N] int."""
    if reduction not in ("mean", "sum", "none"):
        raise ValueError(f"unknown reduction: {reduction!r}")
    if inputs.ndim != 2:
        inputs = inputs.reshape(-1, inputs.shape[-1])
    N, C = inputs.shape
    gamma = float(gamma)
    alpha_vec = None if alpha is None else jnp.asarray(alpha, jnp.float32).reshape(C)

    # Small-N fast path: the originating module calls this with N = batch*seq = 16,
    # where launch + DMA latency of any kernel dominates.
    if N < min_rows_for_kernel:
        return _focal_loss_ref(inputs, targets, alpha_vec, gamma, reduction)

    t = targets.reshape(-1).astype(jnp.int32)

    # ---- layout selection -------------------------------------------------------
    if C <= 64:
        cp = 1
        while cp < C:
            cp *= 2                       # next power of two >= C (divides 128)
        pack = _LANES // cp
        lanes = _LANES
    else:
        cp, pack, lanes = C, 1, C         # fallback: full class dim as lane width

    itemsize = inputs.dtype.itemsize
    out_row_bytes = lanes * 4 if reduction == "none" else 0
    bytes_per_row = lanes * itemsize + lanes * 1 + out_row_bytes   # logits + i8 one-hot
    n_packed = _cdiv(N, pack)
    bn = _pick_block_rows(n_packed, bytes_per_row, block_rows)
    n_packed_pad = _round_up(n_packed, bn)
    grid = n_packed_pad // bn
    n_rows_pad = n_packed_pad * pack

    # ---- wrapper-side packing (cheap XLA ops; the reshape itself is row-major) ---
    x = inputs
    if cp != C:
        x = jnp.pad(x, ((0, 0), (0, cp - C)), constant_values=_PAD_LOGIT)
    if n_rows_pad != N:
        x = jnp.pad(x, ((0, n_rows_pad - N), (0, 0)))
        t = jnp.pad(t, (0, n_rows_pad - N), constant_values=-1)   # never matches a class
    onehot = (t[:, None] == jnp.arange(cp, dtype=jnp.int32)[None, :]).astype(jnp.int8)

    x_k = x.reshape(n_packed_pad, lanes)
    oh_k = onehot.reshape(n_packed_pad, lanes)

    alpha_cp = jnp.ones((cp,), jnp.float32) if alpha_vec is None else (
        jnp.pad(alpha_vec, (0, cp - C)) if cp != C else alpha_vec)
    alpha_row = jnp.tile(alpha_cp, pack).reshape(1, lanes)

    in_specs = [
        pl.BlockSpec((bn, lanes), lambda i: (i, 0)),    # lane-packed logits
        pl.BlockSpec((bn, lanes), lambda i: (i, 0)),    # lane-packed int8 one-hot
        pl.BlockSpec((1, lanes), lambda i: (0, 0)),     # per-lane alpha (VMEM resident)
    ]
    args = [x_k, oh_k, alpha_row]
    if pack > 1:
        lane_idx = jnp.arange(_LANES, dtype=jnp.int32)
        gmat = (lane_idx[:, None] // cp == lane_idx[None, :] // cp).astype(jnp.bfloat16)
        in_specs.append(pl.BlockSpec((_LANES, _LANES), lambda i: (0, 0)))  # resident
        args.append(gmat)

    matmul_flops = 4 * n_packed_pad * lanes * lanes if pack > 1 else 0
    out_bytes = (n_packed_pad * lanes * 4 if reduction == "none"
                 else grid * 8 * lanes * 4)
    cost = pl.CostEstimate(
        flops=12 * n_packed_pad * lanes + matmul_flops,
        transcendentals=2 * n_packed_pad * lanes,
        bytes_accessed=n_packed_pad * lanes * (itemsize + 1) + out_bytes + lanes * 8,
    )
    cparams = pltpu.CompilerParams(dimension_semantics=("parallel",))

    if reduction == "none":
        kernel = functools.partial(
            _rows_kernel_packed if pack > 1 else _rows_kernel_flat, gamma=gamma)
        lanewise = pl.pallas_call(
            kernel,
            out_shape=jax.ShapeDtypeStruct((n_packed_pad, lanes), jnp.float32),
            grid_spec=pltpu.PrefetchScalarGridSpec(
                num_scalar_prefetch=0, grid=(grid,),
                in_specs=in_specs,
                out_specs=pl.BlockSpec((bn, lanes), lambda i: (i, 0))),
            compiler_params=cparams,
            cost_estimate=cost,
        )(*args)
        # Only the target lane of each logical row is nonzero -> per-row loss.
        per_row = jnp.sum(lanewise.reshape(n_rows_pad, cp), axis=-1)
        return per_row[:N]

    kernel = functools.partial(
        _partial_kernel_packed if pack > 1 else _partial_kernel_flat, gamma=gamma)
    partials = pl.pallas_call(
        kernel,
        out_shape=jax.ShapeDtypeStruct((grid * 8, lanes), jnp.float32),
        grid_spec=pltpu.PrefetchScalarGridSpec(
            num_scalar_prefetch=0, grid=(grid,),
            in_specs=in_specs,
            out_specs=pl.BlockSpec((8, lanes), lambda i: (i, 0))),   # disjoint per step
        compiler_params=cparams,
        cost_estimate=cost,
    )(*args)
    total = jnp.sum(partials)
    if reduction == "mean":
        return total / jnp.float32(N)
    return total


if __name__ == "__main__":
    key = jax.random.PRNGKey(0)
    k1, k2, k3, k4, k5, k6, k7, k8 = jax.random.split(key, 8)

    def check(out, ref, rtol=1e-4, atol=1e-5):
        np.testing.assert_allclose(np.asarray(out), np.asarray(ref), rtol=rtol, atol=atol)

    # Shapes implied by the module's usage: logits [batch*seq, n_classes].
    batch, seq, num_classes = 2, 8, 8
    N = batch * seq
    logits = jax.random.normal(k1, (N, num_classes), dtype=jnp.float32)
    targets = jax.random.randint(k2, (N,), 0, num_classes, dtype=jnp.int32)
    alpha = jnp.linspace(0.5, 1.5, num_classes, dtype=jnp.float32)
    gamma = 2.0

    # Kernel path forced (min_rows_for_kernel=0) at the module's own tiny size.
    out = jax.block_until_ready(focal_loss(logits, targets, alpha=alpha, gamma=gamma,
                                           reduction="mean", min_rows_for_kernel=0))
    check(out, _focal_loss_ref(logits, targets, alpha, gamma, "mean"))

    out = jax.block_until_ready(focal_loss(logits, targets, alpha=None, gamma=gamma,
                                           reduction="sum", min_rows_for_kernel=0))
    check(out, _focal_loss_ref(logits, targets, None, gamma, "sum"))

    out = jax.block_until_ready(focal_loss(logits, targets, alpha=alpha, gamma=gamma,
                                           reduction="none", min_rows_for_kernel=0))
    check(out, _focal_loss_ref(logits, targets, alpha, gamma, "none"))

    # Default dispatch at tiny N takes the pure-XLA fast path.
    out = jax.block_until_ready(focal_loss(logits, targets, alpha=alpha, gamma=gamma))
    check(out, _focal_loss_ref(logits, targets, alpha, gamma, "mean"))

    # Larger non-multiple N: multi-tile "parallel" grid + row padding (lane-packed path).
    N2 = 5000
    logits2 = jax.random.normal(k3, (N2, num_classes), dtype=jnp.float32)
    targets2 = jax.random.randint(k4, (N2,), 0, num_classes, dtype=jnp.int32)
    out = jax.block_until_ready(focal_loss(logits2, targets2, alpha=alpha, gamma=gamma,
                                           reduction="mean", block_rows=128,
                                           min_rows_for_kernel=0))
    check(out, _focal_loss_ref(logits2, targets2, alpha, gamma, "mean"))

    # Class count that is not a power of two exercises class padding in the packed layout.
    C3 = 6
    logits3 = jax.random.normal(k5, (200, C3), dtype=jnp.float32)
    targets3 = jax.random.randint(k6, (200,), 0, C3, dtype=jnp.int32)
    alpha3 = jnp.linspace(0.25, 1.0, C3, dtype=jnp.float32)
    out = jax.block_until_ready(focal_loss(logits3, targets3, alpha=alpha3, gamma=gamma,
                                           reduction="mean", min_rows_for_kernel=0))
    check(out, _focal_loss_ref(logits3, targets3, alpha3, gamma, "mean"))

    # Large class count exercises the unpacked fallback kernel.
    C4 = 150
    logits4 = jax.random.normal(k7, (256, C4), dtype=jnp.float32)
    targets4 = jax.random.randint(k8, (256,), 0, C4, dtype=jnp.int32)
    out = jax.block_until_ready(focal_loss(logits4, targets4, alpha=None, gamma=gamma,
                                           reduction="mean", min_rows_for_kernel=0))
    check(out, _focal_loss_ref(logits4, targets4, None, gamma, "mean"))

    print("KERNEL_OK")
</pallas_src>

<mosaic_0001>
module attributes {stable_mosaic.version = 11 : i64} {
  func.func @_partial_kernel_packed(%arg0: i32, %arg1: memref<32x128xf32, #tpu.memory_space<vmem>>, %arg2: memref<32x128xi8, #tpu.memory_space<vmem>>, %arg3: memref<1x128xf32, #tpu.memory_space<vmem>>, %arg4: memref<128x128xbf16, #tpu.memory_space<vmem>>, %arg5: memref<8x128xf32, #tpu.memory_space<vmem>>) attributes {dimension_semantics = [#tpu.dimension_semantics<parallel>], iteration_bounds = array<i64: 1>, scalar_prefetch = 0 : i64, scratch_operands = 0 : i64, tpu.core_type = #tpu.core_type<tc>, window_params = [{transform_indices = @transform_0, window_bounds = array<i64: 32, 128>}, {transform_indices = @transform_1, window_bounds = array<i64: 32, 128>}, {pipeline_mode = #tpu.pipeline_mode<synchronous>, transform_indices = @transform_2, window_bounds = array<i64: 1, 128>}, {pipeline_mode = #tpu.pipeline_mode<synchronous>, transform_indices = @transform_3, window_bounds = array<i64: 128, 128>}, {transform_indices = @transform_4, window_bounds = array<i64: 8, 128>}]} {
    %c0 = arith.constant 0 : index
    %c0_0 = arith.constant 0 : index
    %0 = vector.load %arg1[%c0, %c0_0] : memref<32x128xf32, #tpu.memory_space<vmem>>, vector<32x128xf32>
    %c0_1 = arith.constant 0 : index
    %c0_2 = arith.constant 0 : index
    %1 = vector.load %arg2[%c0_1, %c0_2] : memref<32x128xi8, #tpu.memory_space<vmem>>, vector<32x128xi8>
    %c0_3 = arith.constant 0 : index
    %c0_4 = arith.constant 0 : index
    %2 = vector.load %arg3[%c0_3, %c0_4] : memref<1x128xf32, #tpu.memory_space<vmem>>, vector<1x128xf32>
    %c0_5 = arith.constant 0 : index
    %c0_6 = arith.constant 0 : index
    %3 = vector.load %arg4[%c0_5, %c0_6] : memref<128x128xbf16, #tpu.memory_space<vmem>>, vector<128x128xbf16>
    %cst = arith.constant dense<0xFF800000> : vector<32xf32>
    %4 = vector.multi_reduction <maximumf>, %0, %cst [1] : vector<32x128xf32> to vector<32xf32>
    %5 = vector.shape_cast %4 : vector<32xf32> to vector<32x1xf32>
    %6 = vector.broadcast %5 : vector<32x1xf32> to vector<32x128xf32>
    %7 = arith.subf %0, %6 : vector<32x128xf32>
    %8 = math.exp %7 : vector<32x128xf32>
    %9 = arith.truncf %8 : vector<32x128xf32> to vector<32x128xbf16>
    %10 = arith.extf %9 : vector<32x128xbf16> to vector<32x128xf32>
    %11 = arith.subf %8, %10 : vector<32x128xf32>
    %12 = arith.truncf %11 : vector<32x128xf32> to vector<32x128xbf16>
    %cst_7 = arith.constant dense<0.000000e+00> : vector<32x128xf32>
    %13 = tpu.matmul %9, %3, %cst_7 {dimension_numbers = #tpu.dot_dimension_numbers<[1], [0], [0], [1], [0, 0, 1, 1], [], []>} : vector<32x128xbf16>, vector<128x128xbf16>, vector<32x128xf32> -> vector<32x128xf32>
    %cst_8 = arith.constant dense<0.000000e+00> : vector<32x128xf32>
    %14 = tpu.matmul %12, %3, %cst_8 {dimension_numbers = #tpu.dot_dimension_numbers<[1], [0], [0], [1], [0, 0, 1, 1], [], []>} : vector<32x128xbf16>, vector<128x128xbf16>, vector<32x128xf32> -> vector<32x128xf32>
    %15 = arith.addf %13, %14 : vector<32x128xf32>
    %cst_9 = arith.constant 1.000000e-30 : f32
    %16 = vector.broadcast %cst_9 : f32 to vector<32x128xf32>
    %17 = arith.maximumf %15, %16 : vector<32x128xf32>
    %18 = math.log %17 : vector<32x128xf32>
    %19 = arith.subf %7, %18 : vector<32x128xf32>
    %20 = arith.divf %8, %17 : vector<32x128xf32>
    %cst_10 = arith.constant 1.000000e+00 : f32
    %21 = vector.broadcast %cst_10 : f32 to vector<32x128xf32>
    %22 = arith.subf %21, %20 : vector<32x128xf32>
    %cst_11 = arith.constant 0.000000e+00 : f32
    %23 = vector.broadcast %cst_11 : f32 to vector<32x128xf32>
    %24 = arith.maximumf %22, %23 : vector<32x128xf32>
    %25 = arith.mulf %24, %24 : vector<32x128xf32>
    %26 = arith.sitofp %1 : vector<32x128xi8> to vector<32x128xf32>
    %27 = vector.broadcast %2 : vector<1x128xf32> to vector<32x128xf32>
    %28 = arith.mulf %26, %27 : vector<32x128xf32>
    %29 = arith.mulf %28, %25 : vector<32x128xf32>
    %cst_12 = arith.constant 0.000000e+00 : f32
    %30 = vector.broadcast %cst_12 : f32 to vector<32x128xf32>
    %31 = arith.subf %30, %19 : vector<32x128xf32>
    %32 = arith.mulf %29, %31 : vector<32x128xf32>
    %33 = vector.extract_strided_slice %32 {offsets = [0, 0], sizes = [16, 128], strides = [1, 1]} : vector<32x128xf32> to vector<16x128xf32>
    %34 = vector.extract_strided_slice %32 {offsets = [16, 0], sizes = [16, 128], strides = [1, 1]} : vector<32x128xf32> to vector<16x128xf32>
    %35 = arith.addf %33, %34 : vector<16x128xf32>
    %36 = vector.extract_strided_slice %35 {offsets = [0, 0], sizes = [8, 128], strides = [1, 1]} : vector<16x128xf32> to vector<8x128xf32>
    %37 = vector.extract_strided_slice %35 {offsets = [8, 0], sizes = [8, 128], strides = [1, 1]} : vector<16x128xf32> to vector<8x128xf32>
    %38 = arith.addf %36, %37 : vector<8x128xf32>
    %c0_13 = arith.constant 0 : index
    %c0_14 = arith.constant 0 : index
    %39 = vector.load %arg5[%c0_13, %c0_14] : memref<8x128xf32, #tpu.memory_space<vmem>>, vector<8x128xf32>
    tpu.vector_store %arg5[%c0_13, %c0_14], %38 {strides = array<i32>} : memref<8x128xf32, #tpu.memory_space<vmem>>, vector<8x128xf32>,
    return
  }
  func.func @transform_0(%arg0: i32) -> (i32, i32) {
    %c0_i32 = arith.constant 0 : i32
    %c0_i32_0 = arith.constant 0 : i32
    return %arg0, %c0_i32 : i32, i32
  }
  func.func @transform_1(%arg0: i32) -> (i32, i32) {
    %c0_i32 = arith.constant 0 : i32
    %c0_i32_0 = arith.constant 0 : i32
    return %arg0, %c0_i32 : i32, i32
  }
  func.func @transform_2(%arg0: i32) -> (i32, i32) {
    %c0_i32 = arith.constant 0 : i32
    %c0_i32_0 = arith.constant 0 : i32
    %c0_i32_1 = arith.constant 0 : i32
    return %c0_i32, %c0_i32_0 : i32, i32
  }
  func.func @transform_3(%arg0: i32) -> (i32, i32) {
    %c0_i32 = arith.constant 0 : i32
    %c0_i32_0 = arith.constant 0 : i32
    %c0_i32_1 = arith.constant 0 : i32
    return %c0_i32, %c0_i32_0 : i32, i32
  }
  func.func @transform_4(%arg0: i32) -> (i32, i32) {
    %c0_i32 = arith.constant 0 : i32
    %c0_i32_0 = arith.constant 0 : i32
    return %arg0, %c0_i32 : i32, i32
  }
}

</mosaic_0001>

<bundles_post_ra>
// kernel: tpu_custom_call.1
= control target key start
LH: loop header
LB: loop body
LE: loop exit
PB: predicated region body
PF: predicated region fallthrough
CT: control target
= control target key end

     0   :  { %9 = vsyncpa [#allocation3], 0  ;;  %s668_s0 = inlined_call_operand.hbm [shape: f32[32,128], index: 0, kind: input, shape index: {}]   ;;  %s669_s1 = inlined_call_operand.hbm [shape: s8[32,128], index: 1, kind: input, shape index: {}]   ;;  %s670_s2 = inlined_call_operand.vmem [shape: f32[1,128], index: 2, kind: input, shape index: {}]   ;;  %s671_s3 = inlined_call_operand.hbm [shape: bf16[128,128], index: 3, kind: input, shape index: {}]   ;;  %s672_s4 = inlined_call_operand.hbm [shape: f32[8,128], index: 4, kind: output, shape index: {}]  }
   0x1   :  { %10 = vsyncpa [#allocation6], 0 }
   0x2   :  { %11 = vsyncpa [#allocation4], 0  ;;  %s551_s15 = smov [#allocation5]   ;;  %s552_s17 = smov [#allocation2]  }
   0x3   :  { %s30_s16 = sshll.u32 %s551_s15, 4  ;;  %s17_s18 = sshll.u32 %s552_s17, 4  ;;  %s31_s16 = int_to_ptr.vmem [resolvable:$true] %s30_s16  ;;  %s584_s18 = int_to_ptr.vmem [resolvable:$true] %s17_s18 }
   0x4   :  { %s457_s21 = scalar_lea.hbm %s669_s1, 128 }
   0x5   :  { %p458_p0 = scmp.ne.s32.totalorder %s669_s1, %s457_s21  ;;  %p461_p1 = scmp.lt.u32.totalorder %s457_s21, %s669_s1 }
   0x7   :  { %p463_p2 = pnand %p461_p1, %p458_p0 }
   0x9   :  { %466 = shalt.err (!%p463_p2)
}
   0xa   :  { %s467_s26 = scalar_lea.vmem %s31_s16, 128  ;;  %p472_p4 = scmp.lt.s32.totalorder %s31_s16, %s31_s16 }
   0xb   :  { %p468_p3 = scmp.ne.s32.totalorder %s31_s16, %s467_s26  ;;  %p473_p5 = scmp.lt.s32.totalorder %s467_s26, %s467_s26 }
   0xd   :  { %p474_p6 = por %p473_p5, %p472_p4 }
   0xf   :  { %p475_p7 = pnand %p474_p6, %p468_p3 }
  0x11   :  { %478 = shalt.err (!%p475_p7)
}
  0x12   :  { %33 = dma.hbm_to_vmem [thread:$0]  %s669_s1, 128, %s31_s16, [#allocation6]  }
  0x13   :  { %s479_s5 = scalar_lea.hbm %s668_s0, 512 }
  0x14   :  { %p480_p8 = scmp.ne.s32.totalorder %s668_s0, %s479_s5  ;;  %p483_p9 = scmp.lt.u32.totalorder %s479_s5, %s668_s0 }
  0x16   :  { %p485_p10 = pnand %p483_p9, %p480_p8 }
  0x18   :  { %488 = shalt.err (!%p485_p10)
}
  0x19   :  { %s489_s10 = scalar_lea.vmem %s584_s18, 512  ;;  %p494_p12 = scmp.lt.s32.totalorder %s584_s18, %s584_s18 }
  0x1a   :  { %p490_p11 = scmp.ne.s32.totalorder %s584_s18, %s489_s10  ;;  %p495_p13 = scmp.lt.s32.totalorder %s489_s10, %s489_s10 }
  0x1c   :  { %p496_p0 = por %p495_p13, %p494_p12 }
  0x1e   :  { %p497_p1 = pnand %p496_p0, %p490_p11 }
  0x20   :  { %500 = shalt.err (!%p497_p1)
}
  0x21   :  { %s553_s1 = smov 128   ;;  %s554_s11 = smov 8  }
  0x22   :  { %23 = dma.hbm_to_vmem [thread:$0]  %s668_s0, 512, %s584_s18, [#allocation3], %s553_s1, %s553_s1, %s554_s11  }
  0x23   :  { %s555_s14 = smov [#allocation7]   ;;  %s501_s19 = scalar_lea.hbm %s671_s3, 1024 }
  0x24   :  { %s41_s15 = sshll.u32 %s555_s14, 4  ;;  %p502_p2 = scmp.ne.s32.totalorder %s671_s3, %s501_s19  ;;  %s42_s15 = int_to_ptr.vmem [resolvable:$true] %s41_s15 }
  0x25   :  { %p505_p3 = scmp.lt.u32.totalorder %s501_s19, %s671_s3 }
  0x27   :  { %p507_p4 = pnand %p505_p3, %p502_p2 }
  0x29   :  { %510 = shalt.err (!%p507_p4)
}
  0x2a   :  { %s511_s24 = scalar_lea.vmem %s42_s15, 1024  ;;  %p516_p6 = scmp.lt.s32.totalorder %s42_s15, %s42_s15 }
  0x2b   :  { %p512_p5 = scmp.ne.s32.totalorder %s42_s15, %s511_s24  ;;  %p517_p7 = scmp.lt.s32.totalorder %s511_s24, %s511_s24 }
  0x2d   :  { %p518_p8 = por %p517_p7, %p516_p6 }
  0x2f   :  { %p519_p9 = pnand %p518_p8, %p512_p5 }
  0x31   :  { %522 = shalt.err (!%p519_p9)
}
  0x32   :  { %s556_s0 = smov 64   ;;  %s557_s18 = smov 4  }
  0x33   :  { %47 = dma.hbm_to_vmem [thread:$0]  %s671_s3, 1024, %s42_s15, [#allocation6], %s556_s0, %s556_s0, %s557_s18  }
  0x34   :  { %545 = dma.done.wait [#allocation3], 512  }
  0x35   :  { %546 = vsyncadd [#allocation3], 4294966784 }
  0x36   :  { %547 = dma.done.wait [#allocation6], 1152  }
  0x37   :  { %548 = vsyncadd [#allocation6], 4294966144  ;;  %v60_v0 = vld [vmem:[#allocation2 + $0x10] sm:$0xff]  ;;  %v58_v1 = vld [vmem:[#allocation2] sm:$0xff] }
  0x38   :  { %v61_v2 = vld [vmem:[#allocation2 + $0x18] sm:$0xff]  ;;  %84 = vmax.xlane.f32.xlu1 %v60_v0  ;;  %80 = vmax.xlane.f32.xlu0 %v58_v1  ;;  %v59_v3 = vld [vmem:[#allocation2 + $0x8] sm:$0xff]  ;;  %v426_v5 = vld [vmem:[#allocation7 + $0x8] sm:$0xff]  }
  0x39   :  { %v425_v4 = vld [vmem:[#allocation7] sm:$0xff]   ;;  %v427_v6 = vld [vmem:[#allocation7 + $0x10] sm:$0xff]   ;;  %v428_v7 = vld [vmem:[#allocation7 + $0x18] sm:$0xff]  }
  0x3a   :  { %393 = vmatprep.subr.bf16.mxu0 %v425_v4  ;;  %373 = vmatprep.subr.bf16.mxu1 %v425_v4  ;;  %v429_v8 = vld [vmem:[#allocation7 + $0x20] sm:$0xff]   ;;  %v430_v9 = vld [vmem:[#allocation7 + $0x28] sm:$0xff]   ;;  %v431_v10 = vld [vmem:[#allocation7 + $0x30] sm:$0xff]  }
  0x3b   :  { %394 = vmatpush3.bf16.msra.mxu0 %v425_v4  ;;  %374 = vmatpush3.bf16.msra.mxu1 %v425_v4  ;;  %v432_v11 = vld [vmem:[#allocation7 + $0x38] sm:$0xff]  }
  0x3c   :  { %86 = vmax.xlane.f32.xlu1 %v61_v2  ;;  %82 = vmax.xlane.f32.xlu0 %v59_v3  ;;  %v62_v56 = vld [vmem:[#allocation5] sm:$0xff] }
  0x3d   :  { %395 = vmatprep.subr.bf16.mxu0 %v426_v5  ;;  %375 = vmatprep.subr.bf16.mxu1 %v426_v5  ;;  %v296_v57 = vunpack.c.2.s8 %v62_v56  ;;  %v294_v58 = vunpack.c.0.s8 %v62_v56  ;;  %v297_v62 = vunpack.c.3.s8 %v62_v56  ;;  %v352_v4 = vld [vmem:[%s670_s2] ss:$0 sm:$0xff]  ;;  %s558_s2 = smov [#allocation8]  }
  0x3e   :  { %s334_s28 = sshll.u32 %s558_s2, 4  ;;  %s335_s28 = int_to_ptr.vmem [resolvable:$true] %s334_s28 }
  0x3f   :  { %396 = vmatpush3.bf16.msra.mxu0 %v426_v5  ;;  %376 = vmatpush3.bf16.msra.mxu1 %v426_v5  ;;  %v295_v5 = vunpack.c.1.s8 %v62_v56  ;;  %s523_s29 = scalar_lea.vmem %s335_s28, 128  ;;  %p528_p11 = scmp.lt.s32.totalorder %s335_s28, %s335_s28 }
  0x40   :  { %397 = vmatprep.subr.bf16.mxu0 %v427_v6  ;;  %377 = vmatprep.subr.bf16.mxu1 %v427_v6  ;;  %p524_p10 = scmp.ne.s32.totalorder %s335_s28, %s523_s29  ;;  %p529_p12 = scmp.lt.s32.totalorder %s523_s29, %s523_s29 }
  0x42   :  { %p530_p13 = por %p529_p12, %p528_p11 }
  0x43   :  { %398 = vmatpush3.bf16.msra.mxu0 %v427_v6  ;;  %378 = vmatpush3.bf16.msra.mxu1 %v427_v6  ;;  %v298_v6 = vcvt.s32.f32 %v294_v58 }
  0x44   :  { %399 = vmatprep.subr.bf16.mxu0 %v428_v7  ;;  %379 = vmatprep.subr.bf16.mxu1 %v428_v7  ;;  %p531_p0 = pnand %p530_p13, %p524_p10 }
  0x47   :  { %400 = vmatpush3.bf16.msra.mxu0 %v428_v7  ;;  %380 = vmatpush3.bf16.msra.mxu1 %v428_v7 }
  0x48   :  { %401 = vmatprep.subr.bf16.mxu0 %v429_v8  ;;  %381 = vmatprep.subr.bf16.mxu1 %v429_v8 }
  0x4b   :  { %402 = vmatpush3.bf16.msra.mxu0 %v429_v8  ;;  %382 = vmatpush3.bf16.msra.mxu1 %v429_v8 }
  0x4c   :  { %403 = vmatprep.subr.bf16.mxu0 %v430_v9  ;;  %383 = vmatprep.subr.bf16.mxu1 %v430_v9 }
  0x4f   :  { %404 = vmatpush3.bf16.msra.mxu0 %v430_v9  ;;  %384 = vmatpush3.bf16.msra.mxu1 %v430_v9 }
  0x50   :  { %405 = vmatprep.subr.bf16.mxu0 %v431_v10  ;;  %385 = vmatprep.subr.bf16.mxu1 %v431_v10 }
  0x53   :  { %406 = vmatpush3.bf16.msra.mxu0 %v431_v10  ;;  %386 = vmatpush3.bf16.msra.mxu1 %v431_v10 }
  0x54   :  { %407 = vmatprep.subr.bf16.mxu0 %v432_v11  ;;  %387 = vmatprep.subr.bf16.mxu1 %v432_v11 }
  0x57   :  { %408 = vmatpush3.bf16.msra.mxu0 %v432_v11  ;;  %388 = vmatpush3.bf16.msra.mxu1 %v432_v11 }
  0xc5   :  { %v85_v12 = vpop.xlane.xlu1 %84  ;;  %v81_v13 = vpop.xlane.xlu0 %80 }
  0xc6   :  { %v627_v14 = vsub.f32 %v60_v0, %v85_v12  ;;  %v629_v15 = vsub.f32 %v58_v1, %v81_v13  ;;  %v300_v1 = vcvt.s32.f32 %v296_v57  ;;  %v301_v13 = vcvt.s32.f32 %v297_v62 }
  0xc8   :  { %v96_v16 = vmul.f32 1.442695, %v627_v14  ;;  %v92_v17 = vmul.f32 1.442695, %v629_v15 }
  0xc9   :  { %v87_v18 = vpop.xlane.xlu1 %86  ;;  %v83_v19 = vpop.xlane.xlu0 %82 }
  0xca   :  { %v633_v20 = vsub.f32 %v61_v2, %v87_v18  ;;  %v635_v21 = vsub.f32 %v59_v3, %v83_v19  ;;  %433 = vpow2.f32 %v96_v16 }
  0xcb   :  { %435 = vpow2.f32 %v92_v17 }
  0xcc   :  { %v98_v22 = vmul.f32 1.442695, %v633_v20  ;;  %v94_v23 = vmul.f32 1.442695, %v635_v21 }
  0xce   :  { %437 = vpow2.f32 %v98_v22  ;;  %v310_v22 = vmul.f32 %v352_v4, %v300_v1 }
  0xcf   :  { %439 = vpow2.f32 %v94_v23 }
  0xd4   :  { %v434_v24 = vpop.eup %433 }
  0xd5   :  { %v436_v25 = vpop.eup %435 }
  0xd8   :  { %v639_v26 = vpop.eup %437 }
  0xd9   :  { %v641_v27 = vpop.eup %439  ;;  %v101_v28 = vpack.c.bf16 %v639_v26, %v434_v24 }
  0xda   :  { %v100_v29 = vpack.c.bf16 %v641_v27, %v436_v25 }
  0xdb   :  { %v104_v30 = vunpack.c.l.bf16 %v101_v28  ;;  %v105_v31 = vunpack.c.h.bf16 %v101_v28 }
  0xdc   :  { %409 = vmatprep.mubr.bf16.mxu0 %v100_v29  ;;  %v102_v32 = vunpack.c.l.bf16 %v100_v29  ;;  %v103_v33 = vunpack.c.h.bf16 %v100_v29  ;;  %v299_v29 = vcvt.s32.f32 %v295_v5 }
  0xdd   :  { %410 = vmatmul.mubr.bf16.vlgmr.msra.gmra.mrb[0].mxu0 %v101_v28  ;;  %v108_v34 = vsub.f32 %v434_v24, %v104_v30  ;;  %v109_v35 = vsub.f32 %v639_v26, %v105_v31  ;;  %v308_v30 = vmul.f32 %v352_v4, %v298_v6 }
  0xde   :  { %v106_v36 = vsub.f32 %v436_v25, %v102_v32  ;;  %v107_v37 = vsub.f32 %v641_v27, %v103_v33 }
  0xdf   :  { %v111_v38 = vpack.c.bf16 %v109_v35, %v108_v34  ;;  %v311_v35 = vmul.f32 %v352_v4, %v301_v13 }
  0xe0   :  { %v110_v39 = vpack.c.bf16 %v107_v37, %v106_v36 }
  0xe2   :  { %389 = vmatprep.mubr.bf16.mxu1 %v110_v39 }
  0xe3   :  { %390 = vmatmul.mubr.bf16.vlgmr.msra.gmra.mrb[0].mxu1 %v111_v38 }
 0x1b0   :  { %v411_v40 = vpop.f32.mrb[0].mxu0 }
 0x1b1   :  { %v243_v41 = vpop.f32.mrb[1].mxu0 }
 0x1b2   :  { %v412_v42 = vpop.f32.mrb[2].mxu0 }
 0x1b3   :  { %v246_v43 = vpop.f32.mrb[3].mxu0 }
 0x1b6   :  { %v391_v44 = vpop.f32.mrb[0].mxu1 }
 0x1b7   :  { %v252_v45 = vadd.f32 %v411_v40, %v391_v44  ;;  %v194_v46 = vpop.f32.mrb[1].mxu1 }
 0x1b8   :  { %v244_v47 = vadd.f32 %v243_v41, %v194_v46  ;;  %v392_v48 = vpop.f32.mrb[2].mxu1 }
 0x1b9   :  { %v260_v49 = vmax.f32 %v252_v45, 1e-30  ;;  %v255_v50 = vadd.f32 %v412_v42, %v392_v48  ;;  %v197_v51 = vpop.f32.mrb[3].mxu1 }
 0x1ba   :  { %v258_v52 = vmax.f32 %v244_v47, 1e-30  ;;  %v247_v53 = vadd.f32 %v246_v43, %v197_v51 }
 0x1bb   :  { %441 = vlog2.f32 %v260_v49  ;;  %v261_v54 = vmax.f32 %v255_v50, 1e-30 }
 0x1bc   :  { %443 = vrcp.f32 %v260_v49  ;;  %v259_v55 = vmax.f32 %v247_v53, 1e-30 }
 0x1bd   :  { %445 = vlog2.f32 %v258_v52 }
 0x1be   :  { %447 = vrcp.f32 %v258_v52 }
 0x1bf   :  { %449 = vlog2.f32 %v261_v54 }
 0x1c0   :  { %451 = vrcp.f32 %v261_v54 }
 0x1c1   :  { %453 = vlog2.f32 %v259_v55 }
 0x1c2   :  { %455 = vrcp.f32 %v259_v55 }
 0x1c5   :  { %v442_v59 = vpop.eup %441 }
 0x1c6   :  { %v444_v60 = vpop.eup %443  ;;  %v267_v61 = vmul.f32 0.6931472, %v442_v59 }
 0x1c7   :  { %v446_v63 = vpop.eup %445  ;;  %v279_v0 = vmul.f32 %v444_v60, %v434_v24 }
 0x1c8   :  { %v448_v2 = vpop.eup %447  ;;  %v263_v3 = vmul.f32 0.6931472, %v446_v63  ;;  %v272_v11 = vsub.f32 %v627_v14, %v267_v61 }
 0x1c9   :  { %v450_v7 = vpop.eup %449  ;;  %v275_v8 = vmul.f32 %v448_v2, %v436_v25  ;;  %v284_v9 = vsub.f32 1.0, %v279_v0 }
 0x1ca   :  { %v452_v10 = vpop.eup %451  ;;  %v269_v12 = vmul.f32 0.6931472, %v450_v7  ;;  %v270_v24 = vsub.f32 %v629_v15, %v263_v3  ;;  %v318_v14 = vsub.f32 0.0, %v272_v11  ;;  %v309_v15 = vmul.f32 %v352_v4, %v299_v29 }
 0x1cb   :  { %v454_v16 = vpop.eup %453  ;;  %v281_v17 = vmul.f32 %v452_v10, %v639_v26  ;;  %v282_v18 = vsub.f32 1.0, %v275_v8  ;;  %v288_v19 = vmax.f32 %v284_v9, 0.0 }
 0x1cc   :  { %v456_v23 = vpop.eup %455  ;;  %v265_v28 = vmul.f32 0.6931472, %v454_v16  ;;  %v273_v34 = vsub.f32 %v633_v20, %v269_v12  ;;  %v316_v39 = vsub.f32 0.0, %v270_v24 }
 0x1cd   :  { %v277_v25 = vmul.f32 %v456_v23, %v641_v27  ;;  %v285_v31 = vsub.f32 1.0, %v281_v17  ;;  %v286_v32 = vmax.f32 %v282_v18, 0.0  ;;  %v292_v33 = vmul.f32 %v288_v19, %v288_v19 }
 0x1ce   :  { %v271_v40 = vsub.f32 %v635_v21, %v265_v28  ;;  %v319_v27 = vsub.f32 0.0, %v273_v34 }
 0x1cf   :  { %v283_v36 = vsub.f32 1.0, %v277_v25  ;;  %v289_v26 = vmax.f32 %v285_v31, 0.0  ;;  %v290_v37 = vmul.f32 %v286_v32, %v286_v32  ;;  %v314_v38 = vmul.f32 %v310_v22, %v292_v33 }
 0x1d0   :  { %v317_v48 = vsub.f32 0.0, %v271_v40 }
 0x1d1   :  { %v287_v41 = vmax.f32 %v283_v36, 0.0  ;;  %v293_v42 = vmul.f32 %v289_v26, %v289_v26  ;;  %v312_v43 = vmul.f32 %v308_v30, %v290_v37  ;;  %v322_v44 = vmul.f32 %v318_v14, %v314_v38 }
 0x1d3   :  { %v291_v45 = vmul.f32 %v287_v41, %v287_v41  ;;  %v315_v46 = vmul.f32 %v311_v35, %v293_v42  ;;  %v320_v47 = vmul.f32 %v316_v39, %v312_v43 }
 0x1d5   :  { %v313_v49 = vmul.f32 %v309_v15, %v291_v45  ;;  %v323_v20 = vmul.f32 %v319_v27, %v315_v46  ;;  %v324_v50 = vadd.f32 %v322_v44, %v320_v47 }
 0x1d7   :  { %v321_v51 = vmul.f32 %v317_v48, %v313_v49 }
 0x1d9   :  { %v325_v52 = vadd.f32 %v323_v20, %v321_v51 }
 0x1db   :  { %v326_v53 = vadd.f32 %v325_v52, %v324_v50 }
 0x1dd   :  { %327 = vst [vmem:[#allocation8] sm:$0xff] %v326_v53 }
 0x1de   :  { %534 = shalt.err (!%p531_p0)
}
 0x1df   :  { %s535_s6 = scalar_lea.hbm %s672_s4, 128 }
 0x1e0   :  { %p536_p1 = scmp.ne.s32.totalorder %s672_s4, %s535_s6  ;;  %p539_p2 = scmp.lt.u32.totalorder %s535_s6, %s672_s4 }
 0x1e2   :  { %p541_p3 = pnand %p539_p2, %p536_p1 }
 0x1e4   :  { %544 = shalt.err (!%p541_p3)
}
 0x1e5   :  { %337 = dma.vmem_to_hbm [thread:$0]  %s335_s28, 128, %s672_s4, [#allocation4]  }
 0x1e6   :  { %549 = dma.done.wait [#allocation4], 128  }
 0x1e7   :  { %550 = vsyncadd [#allocation4], 4294967168 }
 0x1e8   :  { %341 = vsyncpa [#allocation3], 1 }
 0x1e9   :  { %342 = vsyncpa [#allocation6], 1 }
 0x1ea   :  { %343 = vsyncpa [#allocation4], 1 }

</bundles_post_ra>
